<compile_context>
chip_gen: v5e
topology: v5e:2x2
jax: 0.10.0
libtpu: 0.0.40
codegen_flags: <defaults>
</compile_context>

<pallas_src>
from functools import partial

import jax
import jax.numpy as jnp
from jax.experimental import pallas as pl
from jax.experimental.pallas import tpu as pltpu


def conv_pool_kernel(x_ref, w_ref, b_ref, o_ref, *, if_pool):
    """x_ref: (TB, L) f32 VMEM block (raw, unpadded input rows).
       w_ref: (3,)    f32 SMEM (Conv1d weight, in=out=1 channel).
       b_ref: (1,)    f32 SMEM (Conv1d bias).
       o_ref: (TB, L) f32 VMEM output block."""
    L = o_ref.shape[1]
    x = x_ref[...]

    # Boundary masks, hoisted and shared by conv and pool (block spans full L,
    # so col==0 / col==L-1 are the true sequence edges).
    col = jax.lax.broadcasted_iota(jnp.int32, x.shape, 1)
    is_first = col == 0
    is_last = col == L - 1

    # --- Conv1d, kernel_size=3, stride=1, padding=1 (zero padding) ---
    # x[t-1]: rotate right by 1, zero at t == 0.
    x_lft = jnp.where(is_first, 0.0, pltpu.roll(x, shift=1, axis=1))
    # x[t+1]: rotate left by 1 == rotate right by L-1 (non-negative shift), zero at t == L-1.
    x_rgt = jnp.where(is_last, 0.0, pltpu.roll(x, shift=L - 1, axis=1))
    y = w_ref[0] * x_lft + w_ref[1] * x + w_ref[2] * x_rgt + b_ref[0]

    if not if_pool:
        o_ref[...] = y
        return

    # --- MaxPool1d, kernel_size=3, stride=1, padding=1 (pad value -inf) ---
    neg_inf = jnp.float32(-jnp.inf)
    y_lft = jnp.where(is_first, neg_inf, pltpu.roll(y, shift=1, axis=1))
    y_rgt = jnp.where(is_last, neg_inf, pltpu.roll(y, shift=L - 1, axis=1))
    o_ref[...] = jnp.maximum(jnp.maximum(y_lft, y), y_rgt)


def _pick_batch_tile(B, L, itemsize, target_bytes=4 * 1024 * 1024):
    """Largest batch tile keeping a (TB, L) block around <=4 MiB; a multiple of
    8 (sublane rule) when actually tiling, else the full batch."""
    row_bytes = max(L * itemsize, 1)
    tb = max(1, target_bytes // row_bytes)
    if tb >= B:
        return B
    return max(8, (tb // 8) * 8)


def conv_module_forward(x, weight, bias, if_pool=True):
    """x: (B, 1, L) float32. weight: (3,) (Conv1d(1,1,3) weight squeezed),
       bias: (1,). Returns (B, 1, L)."""
    assert x.ndim == 3 and x.shape[1] == 1
    B, _, L = x.shape
    x2d = x[:, 0, :]

    tb = _pick_batch_tile(B, L, x2d.dtype.itemsize)
    grid = (pl.cdiv(B, tb),)

    # NOTE: if production shapes ever have tiny L and huge B, transposing so B
    # maps to lanes (and rolling along sublanes) would give lane-dense stores;
    # the generic (B, L) layout is kept here.
    out2d = pl.pallas_call(
        partial(conv_pool_kernel, if_pool=if_pool),
        out_shape=jax.ShapeDtypeStruct((B, L), x2d.dtype),
        grid=grid,
        in_specs=[
            pl.BlockSpec((tb, L), lambda i: (i, 0)),   # input rows (VMEM, pipelined)
            pl.BlockSpec(memory_space=pltpu.SMEM),     # conv weight (scalars)
            pl.BlockSpec(memory_space=pltpu.SMEM),     # conv bias (scalar)
        ],
        out_specs=pl.BlockSpec((tb, L), lambda i: (i, 0)),
        compiler_params=pltpu.CompilerParams(
            dimension_semantics=("parallel",),         # shards batch grid across v7x's 2 TCs
            vmem_limit_bytes=32 * 1024 * 1024,         # safe on v5e/v6e/v7x
        ),
    )(x2d, weight, bias)
    return out2d[:, None, :]


def reference_forward(x, weight, bias, if_pool=True):
    """Pure-JAX reference matching PyTorch Conv1d(+MaxPool1d) semantics."""
    x2d = x[:, 0, :]
    xpad = jnp.pad(x2d, ((0, 0), (1, 1)))
    y = weight[0] * xpad[:, :-2] + weight[1] * xpad[:, 1:-1] + weight[2] * xpad[:, 2:] + bias[0]
    if if_pool:
        ypad = jnp.pad(y, ((0, 0), (1, 1)), constant_values=-jnp.inf)
        y = jnp.maximum(jnp.maximum(ypad[:, :-2], ypad[:, 1:-1]), ypad[:, 2:])
    return y[:, None, :]


if __name__ == "__main__":
    key = jax.random.PRNGKey(0)
    k_x, k_w, k_b = jax.random.split(key, 3)

    B, C, L = 2, 1, 16
    x = jax.random.normal(k_x, (B, C, L), dtype=jnp.float32)

    # Conv1d(1, 1, 3) params: weight (out=1, in=1, k=3) -> (3,), bias -> (1,)
    fan_in = 1 * 3
    bound = 1.0 / (fan_in ** 0.5)
    weight = jax.random.uniform(k_w, (3,), jnp.float32, -bound, bound)
    bias = jax.random.uniform(k_b, (1,), jnp.float32, -bound, bound)

    out = jax.block_until_ready(conv_module_forward(x, weight, bias, if_pool=True))
    ref = reference_forward(x, weight, bias, if_pool=True)
    assert out.shape == (B, 1, L)
    assert jnp.allclose(out, ref, atol=1e-5, rtol=1e-5), "if_pool=True mismatch vs reference"

    out_nc = jax.block_until_ready(conv_module_forward(x, weight, bias, if_pool=False))
    ref_nc = reference_forward(x, weight, bias, if_pool=False)
    assert jnp.allclose(out_nc, ref_nc, atol=1e-5, rtol=1e-5), "if_pool=False mismatch vs reference"

    print("KERNEL_OK")
</pallas_src>

<mosaic_0001>
module attributes {stable_mosaic.version = 11 : i64} {
  func.func @conv_pool_kernel(%arg0: i32, %arg1: memref<2x16xf32, #tpu.memory_space<vmem>>, %arg2: memref<3xf32, #tpu.memory_space<smem>>, %arg3: memref<1xf32, #tpu.memory_space<smem>>, %arg4: memref<2x16xf32, #tpu.memory_space<vmem>>) attributes {dimension_semantics = [#tpu.dimension_semantics<parallel>], iteration_bounds = array<i64: 1>, scalar_prefetch = 0 : i64, scratch_operands = 0 : i64, tpu.core_type = #tpu.core_type<tc>, window_params = [{transform_indices = @transform_0, window_bounds = array<i64: 2, 16>}, {transform_indices = @transform_1, window_bounds = array<i64: 3>}, {transform_indices = @transform_2, window_bounds = array<i64: 1>}, {transform_indices = @transform_3, window_bounds = array<i64: 2, 16>}]} {
    %c0 = arith.constant 0 : index
    %c0_0 = arith.constant 0 : index
    %0 = vector.load %arg1[%c0, %c0_0] : memref<2x16xf32, #tpu.memory_space<vmem>>, vector<2x16xf32>
    %1 = tpu.iota {dimensions = array<i32: 1>} : vector<2x16xi32>
    %c0_i32 = arith.constant 0 : i32
    %2 = vector.broadcast %c0_i32 : i32 to vector<2x16xi32>
    %3 = arith.cmpi eq, %1, %2 : vector<2x16xi32>
    %c15_i32 = arith.constant 15 : i32
    %4 = vector.broadcast %c15_i32 : i32 to vector<2x16xi32>
    %5 = arith.cmpi eq, %1, %4 : vector<2x16xi32>
    %c1_i32 = arith.constant 1 : i32
    %6 = tpu.dynamic_rotate %0 by %c1_i32 dim 1 : vector<2x16xf32>, i32 -> vector<2x16xf32>
    %cst = arith.constant 0.000000e+00 : f32
    %7 = vector.broadcast %cst : f32 to vector<2x16xf32>
    %8 = arith.select %3, %7, %6 : vector<2x16xi1>, vector<2x16xf32>
    %c15_i32_1 = arith.constant 15 : i32
    %9 = tpu.dynamic_rotate %0 by %c15_i32_1 dim 1 : vector<2x16xf32>, i32 -> vector<2x16xf32>
    %cst_2 = arith.constant 0.000000e+00 : f32
    %10 = vector.broadcast %cst_2 : f32 to vector<2x16xf32>
    %11 = arith.select %5, %10, %9 : vector<2x16xi1>, vector<2x16xf32>
    %c0_3 = arith.constant 0 : index
    %12 = memref.load %arg2[%c0_3] : memref<3xf32, #tpu.memory_space<smem>>
    %13 = vector.broadcast %12 : f32 to vector<2x16xf32>
    %14 = arith.mulf %13, %8 : vector<2x16xf32>
    %c1 = arith.constant 1 : index
    %15 = memref.load %arg2[%c1] : memref<3xf32, #tpu.memory_space<smem>>
    %16 = vector.broadcast %15 : f32 to vector<2x16xf32>
    %17 = arith.mulf %16, %0 : vector<2x16xf32>
    %18 = arith.addf %14, %17 : vector<2x16xf32>
    %c2 = arith.constant 2 : index
    %19 = memref.load %arg2[%c2] : memref<3xf32, #tpu.memory_space<smem>>
    %20 = vector.broadcast %19 : f32 to vector<2x16xf32>
    %21 = arith.mulf %20, %11 : vector<2x16xf32>
    %22 = arith.addf %18, %21 : vector<2x16xf32>
    %c0_4 = arith.constant 0 : index
    %23 = memref.load %arg3[%c0_4] : memref<1xf32, #tpu.memory_space<smem>>
    %24 = vector.broadcast %23 : f32 to vector<2x16xf32>
    %25 = arith.addf %22, %24 : vector<2x16xf32>
    %c1_i32_5 = arith.constant 1 : i32
    %26 = tpu.dynamic_rotate %25 by %c1_i32_5 dim 1 : vector<2x16xf32>, i32 -> vector<2x16xf32>
    %cst_6 = arith.constant 0xFF800000 : f32
    %27 = vector.broadcast %cst_6 : f32 to vector<2x16xf32>
    %28 = arith.select %3, %27, %26 : vector<2x16xi1>, vector<2x16xf32>
    %c15_i32_7 = arith.constant 15 : i32
    %29 = tpu.dynamic_rotate %25 by %c15_i32_7 dim 1 : vector<2x16xf32>, i32 -> vector<2x16xf32>
    %cst_8 = arith.constant 0xFF800000 : f32
    %30 = vector.broadcast %cst_8 : f32 to vector<2x16xf32>
    %31 = arith.select %5, %30, %29 : vector<2x16xi1>, vector<2x16xf32>
    %32 = arith.maximumf %28, %25 : vector<2x16xf32>
    %33 = arith.maximumf %32, %31 : vector<2x16xf32>
    %c0_9 = arith.constant 0 : index
    %c0_10 = arith.constant 0 : index
    %34 = vector.load %arg4[%c0_9, %c0_10] : memref<2x16xf32, #tpu.memory_space<vmem>>, vector<2x16xf32>
    tpu.vector_store %arg4[%c0_9, %c0_10], %33 {strides = array<i32>} : memref<2x16xf32, #tpu.memory_space<vmem>>, vector<2x16xf32>,
    return
  }
  func.func @transform_0(%arg0: i32) -> (i32, i32) {
    %c0_i32 = arith.constant 0 : i32
    %c0_i32_0 = arith.constant 0 : i32
    return %arg0, %c0_i32 : i32, i32
  }
  func.func @transform_1(%arg0: i32) -> i32 {
    %c0_i32 = arith.constant 0 : i32
    %c0_i32_0 = arith.constant 0 : i32
    return %c0_i32 : i32
  }
  func.func @transform_2(%arg0: i32) -> i32 {
    %c0_i32 = arith.constant 0 : i32
    %c0_i32_0 = arith.constant 0 : i32
    return %c0_i32 : i32
  }
  func.func @transform_3(%arg0: i32) -> (i32, i32) {
    %c0_i32 = arith.constant 0 : i32
    %c0_i32_0 = arith.constant 0 : i32
    return %arg0, %c0_i32 : i32, i32
  }
}

</mosaic_0001>

<bundles_post_ra>
// kernel: tpu_custom_call.1
= control target key start
LH: loop header
LB: loop body
LE: loop exit
PB: predicated region body
PF: predicated region fallthrough
CT: control target
= control target key end

     0   :  { %9 = vsyncpa [#allocation5], 0  ;;  %s198_s0 = inlined_call_operand.vmem [shape: f32[2,16], index: 0, kind: input, shape index: {}]   ;;  %s199_s1 = inlined_call_operand.hbm [shape: f32[3], index: 1, kind: input, shape index: {}]   ;;  %s200_s2 = inlined_call_operand.<no memory space> [shape: f32[1], index: 2, kind: input, shape index: {}]   ;;  %s201_s3 = inlined_call_operand.hbm [shape: f32[2,16], index: 3, kind: output, shape index: {}]  }
   0x1   :  { %10 = vsyncpa [#allocation4], 0  ;;  %s18_s14 = sshll.u32 %s199_s1, 4  ;;  %s147_s15 = smov [#allocation3]   ;;  %s19_s14 = int_to_ptr.hbm [resolvable:$true] %s18_s14 }
   0x2   :  { %21 = dma.hbm_to_smem %s19_s14, 16, %s147_s15, [#allocation5]  }
   0x3   :  { %143 = dma.done.wait [#allocation5], 16  }
   0x4   :  { %144 = vsyncadd [#allocation5], 4294967280 }
   0x5   :  { %28 = sfence }
   0x6   :  { %v29_v0 = vld [vmem:[%s198_s0] sm:$0x3]  ;;  %s148_s18 = smov 16   ;;  %vm34_vm0 = vcmask 1047680   ;;  %s149_s1 = smov 113   ;;  %v30_v5 = vlaneseq  ;;  %v62_v18 = vstv %s200_s2  ;;  %vm81_vm3 = vcmask 123904  }
   0x7   :  { %35 = vrot.lane.b32.xlu0 %v29_v0, %s148_s18  ;;  %s150_s19 = smov 127   ;;  %s50_s20 = sld [smem:[#allocation3]] }
   0x8   :  { %s100_s0 = sld [smem:[#allocation3 + $0x1]]  ;;  %v31_v6 = vand.u32 127, %v30_v5  ;;  %s151_s2 = smov [#allocation6]  }
   0x9   :  { %s101_s21 = sld [smem:[#allocation3 + $0x2]]  ;;  %s88_s24 = sshll.u32 %s151_s2, 4  ;;  %s89_s24 = int_to_ptr.vmem [resolvable:$true] %s88_s24 }
   0xa   :  { %vm32_vm1 = vcmp.eq.s32.totalorder %v31_v6, 0  ;;  %vm33_vm2 = vcmp.eq.s32.totalorder %v31_v6, 15  ;;  %s90_s27 = sshll.u32 %s201_s3, 4  ;;  %s91_s27 = int_to_ptr.hbm [resolvable:$true] %s90_s27 }
   0xd   :  { %v51_v8 = vstv %s50_s20 }
   0xe   :  { %v54_v9 = vstv %s100_s0 }
   0xf   :  { %v55_v12 = vmul.f32 %v54_v9, %v29_v0  ;;  %v58_v13 = vstv %s101_s21 }
  0x79   :  { %v36_v1 = vpop.permute.xlu0 %35 }
  0x7a   :  { %v37_v2 = vsel %vm34_vm0, %v36_v1, %v29_v0 }
  0x7b   :  { %38 = vrot.lane.b32.xlu0 %v37_v2, %s148_s18 }
  0xed   :  { %v39_v3 = vpop.permute.xlu0 %38 }
  0xee   :  { %v40_v4 = vsel %vm34_vm0, %v39_v3, %v29_v0 }
  0xef   :  { %42 = vrot.lane.b32.xlu1 %v40_v4, %s149_s1 }
  0xf7   :  { %46 = vrot.lane.b32.xlu1 %v40_v4, %s150_s19 }
 0x161   :  { %v43_v7 = vpop.permute.xlu1 %42 }
 0x162   :  { %v45_v10 = vsel %vm32_vm1, 0.0, %v43_v7 }
 0x163   :  { %v52_v11 = vmul.f32 %v51_v8, %v45_v10 }
 0x165   :  { %v56_v16 = vadd.f32 %v55_v12, %v52_v11 }
 0x169   :  { %v47_v14 = vpop.permute.xlu1 %46 }
 0x16a   :  { %v49_v15 = vsel %vm33_vm2, 0.0, %v47_v14 }
 0x16b   :  { %v59_v17 = vmul.f32 %v58_v13, %v49_v15 }
 0x16d   :  { %v60_v19 = vadd.f32 %v59_v17, %v56_v16 }
 0x16f   :  { %v63_v20 = vadd.f32 %v62_v18, %v60_v19 }
 0x171   :  { %64 = vrot.lane.b32.xlu2 %v63_v20, %s148_s18 }
 0x1cb   :  { %v65_v21 = vpop.permute.xlu2 %64 }
 0x1cc   :  { %v66_v22 = vsel %vm34_vm0, %v65_v21, %v63_v20 }
 0x1cd   :  { %67 = vrot.lane.b32.xlu2 %v66_v22, %s148_s18 }
 0x227   :  { %v68_v23 = vpop.permute.xlu2 %67 }
 0x228   :  { %v69_v24 = vsel %vm34_vm0, %v68_v23, %v63_v20 }
 0x229   :  { %75 = vrot.lane.b32.xlu1 %v69_v24, %s150_s19  ;;  %71 = vrot.lane.b32.xlu0 %v69_v24, %s149_s1 }
 0x29b   :  { %v76_v25 = vpop.permute.xlu1 %75  ;;  %v72_v26 = vpop.permute.xlu0 %71 }
 0x29c   :  { %v74_v27 = vsel %vm32_vm1, -inf, %v72_v26  ;;  %v78_v29 = vsel %vm33_vm2, -inf, %v76_v25 }
 0x29d   :  { %v79_v28 = vmax.f32 %v74_v27, %v63_v20 }
 0x29f   :  { %v80_v30 = vmax.f32 %v79_v28, %v78_v29 }
 0x2a1   :  { %82 = vst.msk [vmem:[#allocation6] sm:$0x3] %vm81_vm3, %v80_v30 }
 0x2a2   :  { %93 = dma.vmem_to_hbm [thread:$0]  %s89_s24, 32, %s91_s27, [#allocation4]  }
 0x2a3   :  { %145 = dma.done.wait [#allocation4], 32  }
 0x2a4   :  { %146 = vsyncadd [#allocation4], 4294967264 }
 0x2a5   :  { %98 = vsyncpa [#allocation4], 1 }
 0x2a6   :  { %99 = vsyncpa [#allocation5], 1 }

</bundles_post_ra>
